<compile_context>
chip_gen: v5e
topology: v5e:2x2
jax: 0.10.0
libtpu: 0.0.40
codegen_flags: <defaults>
</compile_context>

<pallas_src>
import jax
import jax.numpy as jnp
from jax.experimental import pallas as pl
from jax.experimental.pallas import tpu as pltpu


def _round_up(x, m):
    return -(-x // m) * m


def t5_head_kernel(x_ref, w1_ref, b1_ref, w2_ref, b2_ref, o_ref):
    # x_ref:  (TM, input_dim)          compute dtype (bf16)
    # w1_ref: (input_dim, inner_pad)   compute dtype
    # b1_ref: (1, inner_pad)           f32
    # w2_ref: (inner_pad, c_pad)       compute dtype
    # b2_ref: (1, c_pad)               f32
    # o_ref:  (TM, c_pad)              out dtype
    h = jnp.dot(x_ref[...], w1_ref[...], preferred_element_type=jnp.float32)
    h = jnp.tanh(h + b1_ref[...])                       # bias add + tanh in f32 (EUP)
    # tanh activations are downcast to the compute dtype for the second MXU
    # pass; accumulation stays f32.
    out = jnp.dot(h.astype(w2_ref.dtype), w2_ref[...],
                  preferred_element_type=jnp.float32) + b2_ref[...]
    o_ref[...] = out.astype(o_ref.dtype)


def t5_classification_head(hidden_states, w1, b1, w2, b2, *,
                           tile_m=512,
                           compute_dtype=jnp.bfloat16,
                           vmem_budget_bytes=40 * 1024 * 1024):
    """hidden_states: [..., input_dim]. Returns logits [..., num_classes]."""
    orig_shape = hidden_states.shape
    input_dim = orig_shape[-1]
    inner_dim = w1.shape[1]
    num_classes = w2.shape[1]
    out_dtype = hidden_states.dtype

    x = hidden_states.reshape(-1, input_dim)
    n = x.shape[0]

    # Lane-dense hidden and output: pad inner/class dims to multiples of 128.
    inner_pad = _round_up(inner_dim, 128)
    c_pad = _round_up(num_classes, 128)

    # Row tiling: as big as possible, never larger than the (8-rounded) row
    # count, always a multiple of 8; shrink until it fits the VMEM budget.
    tile = _round_up(min(tile_m, _round_up(n, 8)), 8)

    cbytes = jnp.dtype(compute_dtype).itemsize
    obytes = jnp.dtype(out_dtype).itemsize

    def vmem_need(tm):
        return (2 * tm * input_dim * cbytes            # x tile, double-buffered
                + input_dim * inner_pad * cbytes       # W1 (resident, Buffered(1))
                + inner_pad * c_pad * cbytes           # W2 (resident)
                + (inner_pad + c_pad) * 4              # biases (resident, f32)
                + tm * inner_pad * 4                   # hidden activation (f32)
                + 2 * tm * c_pad * obytes)             # out tile, double-buffered

    while tile > 8 and vmem_need(tile) > vmem_budget_bytes:
        tile = _round_up(tile // 2, 8)

    n_pad = _round_up(n, tile)
    grid = (n_pad // tile,)

    # Wrapper-side casts / padding (halves DMA volume for the matmul operands).
    x_c = x.astype(compute_dtype)
    if n_pad != n:
        x_c = jnp.pad(x_c, ((0, n_pad - n), (0, 0)))

    w1_c = w1.astype(compute_dtype)
    b1_p = b1.astype(jnp.float32)
    if inner_pad != inner_dim:
        w1_c = jnp.pad(w1_c, ((0, 0), (0, inner_pad - inner_dim)))
        b1_p = jnp.pad(b1_p, ((0, inner_pad - inner_dim),))

    w2_c = w2.astype(compute_dtype)
    b2_p = b2.astype(jnp.float32)
    if inner_pad != inner_dim:
        w2_c = jnp.pad(w2_c, ((0, inner_pad - inner_dim), (0, 0)))
    if c_pad != num_classes:
        w2_c = jnp.pad(w2_c, ((0, 0), (0, c_pad - num_classes)))
        b2_p = jnp.pad(b2_p, ((0, c_pad - num_classes),))

    b1_2d = b1_p.reshape(1, inner_pad)
    b2_2d = b2_p.reshape(1, c_pad)

    # Grid-invariant operands: single VMEM buffer, no double-buffering.
    def resident(shape):
        return pl.BlockSpec(shape, lambda i: (0, 0),
                            pipeline_mode=pl.Buffered(1))

    flops = 2 * n_pad * input_dim * inner_pad + 2 * n_pad * inner_pad * c_pad
    bytes_accessed = (n_pad * input_dim * cbytes
                      + input_dim * inner_pad * cbytes
                      + inner_pad * c_pad * cbytes
                      + (inner_pad + c_pad) * 4
                      + n_pad * c_pad * obytes)

    out = pl.pallas_call(
        t5_head_kernel,
        out_shape=jax.ShapeDtypeStruct((n_pad, c_pad), out_dtype),
        grid_spec=pltpu.PrefetchScalarGridSpec(
            num_scalar_prefetch=0,
            grid=grid,
            in_specs=[
                pl.BlockSpec((tile, input_dim), lambda i: (i, 0)),
                resident((input_dim, inner_pad)),
                resident((1, inner_pad)),
                resident((inner_pad, c_pad)),
                resident((1, c_pad)),
            ],
            out_specs=pl.BlockSpec((tile, c_pad), lambda i: (i, 0)),
        ),
        compiler_params=pltpu.CompilerParams(
            dimension_semantics=("parallel",),
            vmem_limit_bytes=int(min(64 * 1024 * 1024,
                                     max(32 * 1024 * 1024,
                                         2 * vmem_need(tile)))),
        ),
        cost_estimate=pl.CostEstimate(
            flops=flops,
            transcendentals=n_pad * inner_pad,
            bytes_accessed=bytes_accessed,
        ),
    )(x_c, w1_c, b1_2d, w2_c, b2_2d)

    out = out[:n, :num_classes]
    return out.reshape(*orig_shape[:-1], num_classes)


def init_params(key, input_dim, inner_dim, num_classes):
    """Deterministic init mirroring nn.Linear default (uniform +/- 1/sqrt(fan_in))."""
    k1, k2, k3, k4 = jax.random.split(key, 4)
    lim1 = 1.0 / (input_dim ** 0.5)
    lim2 = 1.0 / (inner_dim ** 0.5)
    w1 = jax.random.uniform(k1, (input_dim, inner_dim), jnp.float32, -lim1, lim1)
    b1 = jax.random.uniform(k2, (inner_dim,), jnp.float32, -lim1, lim1)
    w2 = jax.random.uniform(k3, (inner_dim, num_classes), jnp.float32, -lim2, lim2)
    b2 = jax.random.uniform(k4, (num_classes,), jnp.float32, -lim2, lim2)
    return w1, b1, w2, b2


if __name__ == "__main__":
    batch, seq, input_dim, inner_dim, num_classes = 2, 8, 32, 64, 8
    key = jax.random.PRNGKey(0)
    kx, kp = jax.random.split(key)

    hidden_states = jax.random.normal(kx, (batch, seq, input_dim), jnp.float32)
    w1, b1, w2, b2 = init_params(kp, input_dim, inner_dim, num_classes)

    logits = t5_classification_head(hidden_states, w1, b1, w2, b2)
    logits = jax.block_until_ready(logits)

    # Reference in plain JAX (dropout = identity in eval mode). Kernel runs the
    # matmuls in bf16 with f32 accumulation, so compare with a loose tolerance.
    ref = jnp.tanh(hidden_states @ w1 + b1) @ w2 + b2
    assert logits.shape == (batch, seq, num_classes)
    assert jnp.allclose(logits, ref, atol=5e-2, rtol=5e-2), (
        float(jnp.max(jnp.abs(logits - ref))))

    print("KERNEL_OK")
</pallas_src>

<mosaic_0001>
module attributes {stable_mosaic.version = 11 : i64} {
  func.func @t5_head_kernel(%arg0: i32, %arg1: memref<16x32xbf16, #tpu.memory_space<vmem>>, %arg2: memref<32x128xbf16, #tpu.memory_space<vmem>>, %arg3: memref<1x128xf32, #tpu.memory_space<vmem>>, %arg4: memref<128x128xbf16, #tpu.memory_space<vmem>>, %arg5: memref<1x128xf32, #tpu.memory_space<vmem>>, %arg6: memref<16x128xf32, #tpu.memory_space<vmem>>) attributes {dimension_semantics = [#tpu.dimension_semantics<parallel>], iteration_bounds = array<i64: 1>, scalar_prefetch = 0 : i64, scratch_operands = 0 : i64, tpu.core_type = #tpu.core_type<tc>, window_params = [{transform_indices = @transform_0, window_bounds = array<i64: 16, 32>}, {pipeline_mode = #tpu.pipeline_mode<synchronous>, transform_indices = @transform_1, window_bounds = array<i64: 32, 128>}, {pipeline_mode = #tpu.pipeline_mode<synchronous>, transform_indices = @transform_2, window_bounds = array<i64: 1, 128>}, {pipeline_mode = #tpu.pipeline_mode<synchronous>, transform_indices = @transform_3, window_bounds = array<i64: 128, 128>}, {pipeline_mode = #tpu.pipeline_mode<synchronous>, transform_indices = @transform_4, window_bounds = array<i64: 1, 128>}, {transform_indices = @transform_5, window_bounds = array<i64: 16, 128>}]} {
    %c0 = arith.constant 0 : index
    %c0_0 = arith.constant 0 : index
    %0 = vector.load %arg1[%c0, %c0_0] : memref<16x32xbf16, #tpu.memory_space<vmem>>, vector<16x32xbf16>
    %c0_1 = arith.constant 0 : index
    %c0_2 = arith.constant 0 : index
    %1 = vector.load %arg2[%c0_1, %c0_2] : memref<32x128xbf16, #tpu.memory_space<vmem>>, vector<32x128xbf16>
    %cst = arith.constant dense<0.000000e+00> : vector<16x128xf32>
    %2 = tpu.matmul %0, %1, %cst {dimension_numbers = #tpu.dot_dimension_numbers<[1], [0], [0], [1], [0, 0, 1, 1], [], []>} : vector<16x32xbf16>, vector<32x128xbf16>, vector<16x128xf32> -> vector<16x128xf32>
    %c0_3 = arith.constant 0 : index
    %c0_4 = arith.constant 0 : index
    %3 = vector.load %arg3[%c0_3, %c0_4] : memref<1x128xf32, #tpu.memory_space<vmem>>, vector<1x128xf32>
    %4 = vector.broadcast %3 : vector<1x128xf32> to vector<16x128xf32>
    %5 = arith.addf %2, %4 : vector<16x128xf32>
    %6 = math.tanh %5 : vector<16x128xf32>
    %7 = arith.truncf %6 : vector<16x128xf32> to vector<16x128xbf16>
    %c0_5 = arith.constant 0 : index
    %c0_6 = arith.constant 0 : index
    %8 = vector.load %arg4[%c0_5, %c0_6] : memref<128x128xbf16, #tpu.memory_space<vmem>>, vector<128x128xbf16>
    %cst_7 = arith.constant dense<0.000000e+00> : vector<16x128xf32>
    %9 = tpu.matmul %7, %8, %cst_7 {dimension_numbers = #tpu.dot_dimension_numbers<[1], [0], [0], [1], [0, 0, 1, 1], [], []>} : vector<16x128xbf16>, vector<128x128xbf16>, vector<16x128xf32> -> vector<16x128xf32>
    %c0_8 = arith.constant 0 : index
    %c0_9 = arith.constant 0 : index
    %10 = vector.load %arg5[%c0_8, %c0_9] : memref<1x128xf32, #tpu.memory_space<vmem>>, vector<1x128xf32>
    %11 = vector.broadcast %10 : vector<1x128xf32> to vector<16x128xf32>
    %12 = arith.addf %9, %11 : vector<16x128xf32>
    %c0_10 = arith.constant 0 : index
    %c0_11 = arith.constant 0 : index
    %13 = vector.load %arg6[%c0_10, %c0_11] : memref<16x128xf32, #tpu.memory_space<vmem>>, vector<16x128xf32>
    tpu.vector_store %arg6[%c0_10, %c0_11], %12 {strides = array<i32>} : memref<16x128xf32, #tpu.memory_space<vmem>>, vector<16x128xf32>,
    return
  }
  func.func @transform_0(%arg0: i32) -> (i32, i32) {
    %c0_i32 = arith.constant 0 : i32
    %c0_i32_0 = arith.constant 0 : i32
    return %arg0, %c0_i32 : i32, i32
  }
  func.func @transform_1(%arg0: i32) -> (i32, i32) {
    %c0_i32 = arith.constant 0 : i32
    %c0_i32_0 = arith.constant 0 : i32
    %c0_i32_1 = arith.constant 0 : i32
    return %c0_i32, %c0_i32_0 : i32, i32
  }
  func.func @transform_2(%arg0: i32) -> (i32, i32) {
    %c0_i32 = arith.constant 0 : i32
    %c0_i32_0 = arith.constant 0 : i32
    %c0_i32_1 = arith.constant 0 : i32
    return %c0_i32, %c0_i32_0 : i32, i32
  }
  func.func @transform_3(%arg0: i32) -> (i32, i32) {
    %c0_i32 = arith.constant 0 : i32
    %c0_i32_0 = arith.constant 0 : i32
    %c0_i32_1 = arith.constant 0 : i32
    return %c0_i32, %c0_i32_0 : i32, i32
  }
  func.func @transform_4(%arg0: i32) -> (i32, i32) {
    %c0_i32 = arith.constant 0 : i32
    %c0_i32_0 = arith.constant 0 : i32
    %c0_i32_1 = arith.constant 0 : i32
    return %c0_i32, %c0_i32_0 : i32, i32
  }
  func.func @transform_5(%arg0: i32) -> (i32, i32) {
    %c0_i32 = arith.constant 0 : i32
    %c0_i32_0 = arith.constant 0 : i32
    return %arg0, %c0_i32 : i32, i32
  }
}

</mosaic_0001>

<bundles_post_ra>
// kernel: tpu_custom_call.1
= control target key start
LH: loop header
LB: loop body
LE: loop exit
PB: predicated region body
PF: predicated region fallthrough
CT: control target
= control target key end

     0   :  { %10 = vsyncpa [#allocation3], 0  ;;  %s449_s0 = inlined_call_operand.hbm [shape: bf16[16,32], index: 0, kind: input, shape index: {}]   ;;  %s450_s1 = inlined_call_operand.hbm [shape: bf16[32,128], index: 1, kind: input, shape index: {}]   ;;  %s451_s2 = inlined_call_operand.vmem [shape: f32[1,128], index: 2, kind: input, shape index: {}]   ;;  %s452_s3 = inlined_call_operand.hbm [shape: bf16[128,128], index: 3, kind: input, shape index: {}]   ;;  %s453_s4 = inlined_call_operand.vmem [shape: f32[1,128], index: 4, kind: input, shape index: {}]   ;;  %s454_s5 = inlined_call_operand.hbm [shape: f32[16,128], index: 5, kind: output, shape index: {}]  }
   0x1   :  { %11 = vsyncpa [#allocation6], 0 }
   0x2   :  { %12 = vsyncpa [#allocation4], 0  ;;  %s30_s20 = sshll.u32 %s450_s1, 4  ;;  %s393_s21 = smov [#allocation5]   ;;  %s31_s20 = int_to_ptr.hbm [resolvable:$true] %s30_s20 }
   0x3   :  { %s32_s22 = sshll.u32 %s393_s21, 4  ;;  %s17_s25 = sshll.u32 %s449_s0, 4  ;;  %s33_s22 = int_to_ptr.vmem [resolvable:$true] %s32_s22  ;;  %s18_s25 = int_to_ptr.hbm [resolvable:$true] %s17_s25 }
   0x4   :  { %s394_s26 = smov 64   ;;  %s395_s27 = smov 4  }
   0x5   :  { %38 = dma.hbm_to_vmem [thread:$0]  %s31_s20, 256, %s33_s22, [#allocation6], %s394_s26, %s394_s26, %s395_s27  }
   0x6   :  { %s396_s28 = smov [#allocation2]   ;;  %s45_s7 = sshll.u32 %s452_s3, 4  ;;  %s46_s7 = int_to_ptr.hbm [resolvable:$true] %s45_s7 }
   0x7   :  { %s19_s29 = sshll.u32 %s396_s28, 4  ;;  %s397_s1 = smov [#allocation7]   ;;  %s20_s29 = int_to_ptr.vmem [resolvable:$true] %s19_s29 }
   0x8   :  { %25 = dma.hbm_to_vmem [thread:$0]  %s18_s25, 128, %s20_s29, [#allocation3], %s394_s26, %s394_s26, %s395_s27  }
   0x9   :  { %s47_s8 = sshll.u32 %s397_s1, 4  ;;  %s48_s8 = int_to_ptr.vmem [resolvable:$true] %s47_s8 }
   0xa   :  { %53 = dma.hbm_to_vmem [thread:$0]  %s46_s7, 1024, %s48_s8, [#allocation6], %s394_s26, %s394_s26, %s395_s27  }
   0xb   :  { %387 = dma.done.wait [#allocation3], 128  }
   0xc   :  { %388 = vsyncadd [#allocation3], 4294967168 }
   0xd   :  { %389 = dma.done.wait [#allocation6], 1280  }
   0xe   :  { %390 = vsyncadd [#allocation6], 4294966016  ;;  %v268_v0 = vld [vmem:[#allocation5 + $0x8] sm:$0xff]  ;;  %v267_v2 = vld [vmem:[#allocation5] sm:$0xff]  ;;  %vm96_vm0 = vcmask 261120   ;;  %s398_s11 = smov [#allocation8]  }
   0xf   :  { %v276_v1 = vld [vmem:[#allocation7 + $0x38] sm:$0xff]  ;;  %106 = vmatpush.bf16.msra.mxu0 %v268_v0  ;;  %v275_v3 = vld [vmem:[#allocation7 + $0x30] sm:$0xff]  ;;  %v266_v4 = vld [vmem:[#allocation2] sm:$0xff]  ;;  %s205_s12 = sshll.u32 %s398_s11, 4  ;;  %s207_s14 = sshll.u32 %s454_s5, 4  ;;  %s206_s12 = int_to_ptr.vmem [resolvable:$true] %s205_s12  ;;  %s208_s14 = int_to_ptr.hbm [resolvable:$true] %s207_s14 }
  0x10   :  { %185 = vmatpush.bf16.msra.mxu1 %v276_v1  ;;  %v274_v5 = vld [vmem:[#allocation7 + $0x28] sm:$0xff]  ;;  %v273_v6 = vld [vmem:[#allocation7 + $0x20] sm:$0xff]  ;;  %v272_v7 = vld [vmem:[#allocation7 + $0x18] sm:$0xff]  ;;  %s399_s15 = smov 128   ;;  %s400_s16 = smov 8  }
  0x11   :  { %v271_v8 = vld [vmem:[#allocation7 + $0x10] sm:$0xff]  ;;  %v270_v9 = vld [vmem:[#allocation7 + $0x8] sm:$0xff]  ;;  %v269_v10 = vld [vmem:[#allocation7] sm:$0xff] }
  0x12   :  { %v285_v12 = vld [vmem:[%s451_s2] ss:$0 sm:$0xff] }
  0x13   :  { %107 = vmatpush.bf16.msra.mxu0 %v267_v2  ;;  %v286_v19 = vld [vmem:[%s453_s4] ss:$0 sm:$0xff] }
  0x14   :  { %186 = vmatpush.bf16.msra.mxu1 %v275_v3 }
  0x16   :  { %233 = vmatmul.msk.bf16.vlgmr.msra.gmra.mxu0 %vm96_vm0, %v266_v4 }
  0x18   :  { %187 = vmatpush.bf16.msra.mxu1 %v274_v5 }
  0x1c   :  { %188 = vmatpush.bf16.msra.mxu1 %v273_v6 }
  0x20   :  { %189 = vmatpush.bf16.msra.mxu1 %v272_v7 }
  0x24   :  { %190 = vmatpush.bf16.msra.mxu1 %v271_v8 }
  0x28   :  { %191 = vmatpush.bf16.msra.mxu1 %v270_v9 }
  0x2c   :  { %192 = vmatpush.bf16.msra.mxu1 %v269_v10 }
  0x93   :  { %v109_v11 = vpop.f32.mrf.mxu0 }
  0x94   :  { %v110_v13 = vadd.f32 %v285_v12, %v109_v11 }
  0x96   :  { %287 = vtanh.f32 %v110_v13 }
  0x9b   :  { %v111_v14 = vpop.f32.mrf.mxu0 }
  0x9c   :  { %v112_v15 = vadd.f32 %v285_v12, %v111_v14  ;;  %v288_v16 = vpop.eup %287 }
  0x9e   :  { %289 = vtanh.f32 %v112_v15 }
  0xa4   :  { %v290_v17 = vpop.eup %289 }
  0xa5   :  { %v116_v18 = vpack.c.bf16 %v290_v17, %v288_v16 }
  0xa7   :  { %193 = vmatmul.bf16.vlgmr.msra.gmra.mxu1 %v116_v18 }
 0x124   :  { %v194_v20 = vpop.f32.mrf.mxu1 }
 0x125   :  { %v195_v21 = vadd.f32 %v286_v19, %v194_v20 }
 0x127   :  { %199 = vst [vmem:[#allocation8] sm:$0xff] %v195_v21 }
 0x12c   :  { %v196_v22 = vpop.f32.mrf.mxu1 }
 0x12d   :  { %v197_v23 = vadd.f32 %v286_v19, %v196_v22 }
 0x12f   :  { %200 = vst [vmem:[#allocation8 + $0x8] sm:$0xff] %v197_v23 }
 0x130   :  { %213 = dma.vmem_to_hbm [thread:$0]  %s206_s12, 256, %s208_s14, [#allocation4], %s399_s15, %s399_s15, %s400_s16  }
 0x131   :  { %391 = dma.done.wait [#allocation4], 256  }
 0x132   :  { %392 = vsyncadd [#allocation4], 4294967040 }
 0x133   :  { %218 = vsyncpa [#allocation3], 1 }
 0x134   :  { %219 = vsyncpa [#allocation6], 1 }
 0x135   :  { %220 = vsyncpa [#allocation4], 1 }

</bundles_post_ra>
